<compile_context>
chip_gen: v7x
topology: tpu7x:2x2x1
jax: 0.10.0
libtpu: 0.0.40
codegen_flags: <defaults>
</compile_context>

<pallas_src>
import jax
import jax.numpy as jnp
from jax.experimental import pallas as pl
from jax.experimental.pallas import tpu as pltpu


def _mlp_kernel(x_ref, w1_ref, b1_ref, w2_ref, b2_ref, o_ref):
    """relu(x @ W1 + b1) @ W2 + b2 for one (tb, input_size) batch tile."""
    # fp32 x tile from HBM -> bf16 for the MXU (cast hides under the DMA).
    x = x_ref[...].astype(jnp.bfloat16)
    # fc1: bf16 inputs, fp32 accumulation on the MXU.
    h = jnp.dot(x, w1_ref[...], preferred_element_type=jnp.float32)
    # Bias + ReLU in fp32 on the VPU (v5e has no bf16 VALU).
    h = jnp.maximum(h + b1_ref[...], 0.0)
    # fc2: cast activations back to bf16 for the MXU, accumulate fp32.
    out = jnp.dot(h.astype(jnp.bfloat16), w2_ref[...],
                  preferred_element_type=jnp.float32)
    # bf16 store: halves store bytes / masked vst count (num_classes < 128).
    o_ref[...] = (out + b2_ref[...]).astype(o_ref.dtype)


def _round_up(n, m):
    return (n + m - 1) // m * m


def _round_down(n, m):
    return max(m, n // m * m)


def _vmem_estimate(tb, input_size, hidden, num_classes):
    """Conservative VMEM bytes for one grid step (double-buffered I/O)."""
    x_io = 2 * tb * input_size * 4                       # fp32 x tiles
    o_io = 2 * tb * num_classes * 2                      # bf16 out tiles
    w_io = 2 * (input_size * hidden + hidden * num_classes) * 2  # bf16 weights
    b_io = 2 * 2 * 8 * 128 * 4                           # padded bias tiles
    # live intermediates: bf16 x copy, fp32+bf16 h, fp32 out
    live = tb * input_size * 2 + tb * hidden * 6 + tb * num_classes * 4
    return x_io + o_io + w_io + b_io + live


def nn_forward(x, w1, b1, w2, b2, *, tb=2048):
    """Two-layer MLP forward as a single batch-tiled Pallas kernel.

    x:  (B, input_size) float32
    w1: (input_size, 50)  (bf16 preferred; cast once if not)
    b1: (50,) float32
    w2: (50, num_classes) (bf16 preferred), b2: (num_classes,) float32
    returns (B, num_classes) bfloat16 logits.
    """
    B, input_size = x.shape
    hidden = w1.shape[-1]
    num_classes = w2.shape[-1]

    # Weights in bf16 (no-op if already pre-cast by init_params); biases fp32.
    w1 = w1 if w1.dtype == jnp.bfloat16 else w1.astype(jnp.bfloat16)
    w2 = w2 if w2.dtype == jnp.bfloat16 else w2.astype(jnp.bfloat16)
    b1_2d = b1.reshape(1, hidden).astype(jnp.float32)
    b2_2d = b2.reshape(1, num_classes).astype(jnp.float32)

    # ---- batch-tile selection -------------------------------------------
    # 64-row granularity (sublane / bf16-packing friendly) and >=2 grid
    # steps whenever B allows, so v7x's 2 TensorCores both get work.
    tb = min(tb, max(64, _round_up(pl.cdiv(B, 2), 64)))

    # VMEM budget: v7x has 64 MiB/TC vs 128 MiB on v5e/v6e.
    try:
        vmem_cap = int(pltpu.get_tpu_info().vmem_capacity_bytes)
    except Exception:
        vmem_cap = 64 * 1024 * 1024  # conservative (v7x) fallback
    tile_budget = vmem_cap // 2
    while tb > 64 and _vmem_estimate(tb, input_size, hidden,
                                     num_classes) > tile_budget:
        tb = _round_down(tb // 2, 64)
    vmem_limit = min(int(0.75 * vmem_cap), 100 * 1024 * 1024)

    grid = (pl.cdiv(B, tb),)

    return pl.pallas_call(
        _mlp_kernel,
        out_shape=jax.ShapeDtypeStruct((B, num_classes), jnp.bfloat16),
        grid=grid,
        in_specs=[
            # x streams in (tb, input_size) fp32 tiles along the batch axis.
            pl.BlockSpec((tb, input_size), lambda i: (i, 0)),
            # Weights / biases: same (0, 0) block every step -> stay resident.
            pl.BlockSpec((input_size, hidden), lambda i: (0, 0)),
            pl.BlockSpec((1, hidden), lambda i: (0, 0)),
            pl.BlockSpec((hidden, num_classes), lambda i: (0, 0)),
            pl.BlockSpec((1, num_classes), lambda i: (0, 0)),
        ],
        out_specs=pl.BlockSpec((tb, num_classes), lambda i: (i, 0)),
        compiler_params=pltpu.CompilerParams(
            dimension_semantics=("parallel",),
            vmem_limit_bytes=vmem_limit),
    )(x, w1, b1_2d, w2, b2_2d)


def init_params(key, input_size, num_classes, hidden=50):
    """Init mimicking torch.nn.Linear defaults; weights pre-cast to bf16 once
    (so repeated nn_forward calls never re-cast them), biases fp32."""
    k1, k2, k3, k4 = jax.random.split(key, 4)
    bound1 = 1.0 / jnp.sqrt(jnp.float32(input_size))
    bound2 = 1.0 / jnp.sqrt(jnp.float32(hidden))
    w1 = jax.random.uniform(k1, (input_size, hidden), jnp.float32,
                            minval=-bound1, maxval=bound1).astype(jnp.bfloat16)
    b1 = jax.random.uniform(k2, (hidden,), jnp.float32,
                            minval=-bound1, maxval=bound1)
    w2 = jax.random.uniform(k3, (hidden, num_classes), jnp.float32,
                            minval=-bound2, maxval=bound2).astype(jnp.bfloat16)
    b2 = jax.random.uniform(k4, (num_classes,), jnp.float32,
                            minval=-bound2, maxval=bound2)
    return w1, b1, w2, b2


if __name__ == "__main__":
    key = jax.random.PRNGKey(0)
    batch, input_size, num_classes = 8, 32, 10

    kx, kp = jax.random.split(key)
    x = jax.random.normal(kx, (batch, input_size), jnp.float32)
    w1, b1, w2, b2 = init_params(kp, input_size, num_classes)

    out = nn_forward(x, w1, b1, w2, b2)
    out = jax.block_until_ready(out)

    # Pure-JAX reference of the same math (bf16 matmul inputs, fp32 accum,
    # bf16 output).
    x_r = x.astype(jnp.bfloat16).astype(jnp.float32)
    w1_r = w1.astype(jnp.float32)
    w2_r = w2.astype(jnp.float32)
    h_r = jnp.maximum(x_r @ w1_r + b1, 0.0)
    ref = h_r.astype(jnp.bfloat16).astype(jnp.float32) @ w2_r + b2

    assert out.shape == (batch, num_classes)
    assert out.dtype == jnp.bfloat16
    err = jnp.max(jnp.abs(out.astype(jnp.float32) - ref))
    assert jnp.allclose(out.astype(jnp.float32), ref, atol=2e-2, rtol=2e-2), err

    print("KERNEL_OK")
</pallas_src>

<mosaic_0001>
module attributes {stable_mosaic.version = 11 : i64} {
  func.func @_mlp_kernel(%arg0: i32, %arg1: memref<64x32xf32, #tpu.memory_space<vmem>>, %arg2: memref<32x50xbf16, #tpu.memory_space<vmem>>, %arg3: memref<1x50xf32, #tpu.memory_space<vmem>>, %arg4: memref<50x10xbf16, #tpu.memory_space<vmem>>, %arg5: memref<1x10xf32, #tpu.memory_space<vmem>>, %arg6: memref<64x10xbf16, #tpu.memory_space<vmem>>) attributes {dimension_semantics = [#tpu.dimension_semantics<parallel>], iteration_bounds = array<i64: 1>, scalar_prefetch = 0 : i64, scratch_operands = 0 : i64, tpu.core_type = #tpu.core_type<tc>, window_params = [{transform_indices = @transform_0, window_bounds = array<i64: 64, 32>}, {pipeline_mode = #tpu.pipeline_mode<synchronous>, transform_indices = @transform_1, window_bounds = array<i64: 32, 50>}, {pipeline_mode = #tpu.pipeline_mode<synchronous>, transform_indices = @transform_2, window_bounds = array<i64: 1, 50>}, {pipeline_mode = #tpu.pipeline_mode<synchronous>, transform_indices = @transform_3, window_bounds = array<i64: 50, 10>}, {pipeline_mode = #tpu.pipeline_mode<synchronous>, transform_indices = @transform_4, window_bounds = array<i64: 1, 10>}, {transform_indices = @transform_5, window_bounds = array<i64: 64, 10>}]} {
    %c0 = arith.constant 0 : index
    %c0_0 = arith.constant 0 : index
    %0 = vector.load %arg1[%c0, %c0_0] : memref<64x32xf32, #tpu.memory_space<vmem>>, vector<64x32xf32>
    %1 = arith.truncf %0 : vector<64x32xf32> to vector<64x32xbf16>
    %c0_1 = arith.constant 0 : index
    %c0_2 = arith.constant 0 : index
    %2 = vector.load %arg2[%c0_1, %c0_2] : memref<32x50xbf16, #tpu.memory_space<vmem>>, vector<32x50xbf16>
    %cst = arith.constant dense<0.000000e+00> : vector<64x50xf32>
    %3 = tpu.matmul %1, %2, %cst {dimension_numbers = #tpu.dot_dimension_numbers<[1], [0], [0], [1], [0, 0, 1, 1], [], []>} : vector<64x32xbf16>, vector<32x50xbf16>, vector<64x50xf32> -> vector<64x50xf32>
    %c0_3 = arith.constant 0 : index
    %c0_4 = arith.constant 0 : index
    %4 = vector.load %arg3[%c0_3, %c0_4] : memref<1x50xf32, #tpu.memory_space<vmem>>, vector<1x50xf32>
    %5 = vector.broadcast %4 : vector<1x50xf32> to vector<64x50xf32>
    %6 = arith.addf %3, %5 : vector<64x50xf32>
    %cst_5 = arith.constant 0.000000e+00 : f32
    %7 = vector.broadcast %cst_5 : f32 to vector<64x50xf32>
    %8 = arith.maximumf %6, %7 : vector<64x50xf32>
    %9 = arith.truncf %8 : vector<64x50xf32> to vector<64x50xbf16>
    %c0_6 = arith.constant 0 : index
    %c0_7 = arith.constant 0 : index
    %10 = vector.load %arg4[%c0_6, %c0_7] : memref<50x10xbf16, #tpu.memory_space<vmem>>, vector<50x10xbf16>
    %cst_8 = arith.constant dense<0.000000e+00> : vector<64x10xf32>
    %11 = tpu.matmul %9, %10, %cst_8 {dimension_numbers = #tpu.dot_dimension_numbers<[1], [0], [0], [1], [0, 0, 1, 1], [], []>} : vector<64x50xbf16>, vector<50x10xbf16>, vector<64x10xf32> -> vector<64x10xf32>
    %c0_9 = arith.constant 0 : index
    %c0_10 = arith.constant 0 : index
    %12 = vector.load %arg5[%c0_9, %c0_10] : memref<1x10xf32, #tpu.memory_space<vmem>>, vector<1x10xf32>
    %13 = vector.broadcast %12 : vector<1x10xf32> to vector<64x10xf32>
    %14 = arith.addf %11, %13 : vector<64x10xf32>
    %15 = arith.truncf %14 : vector<64x10xf32> to vector<64x10xbf16>
    %c0_11 = arith.constant 0 : index
    %c0_12 = arith.constant 0 : index
    %16 = vector.load %arg6[%c0_11, %c0_12] : memref<64x10xbf16, #tpu.memory_space<vmem>>, vector<64x10xbf16>
    tpu.vector_store %arg6[%c0_11, %c0_12], %15 {strides = array<i32>} : memref<64x10xbf16, #tpu.memory_space<vmem>>, vector<64x10xbf16>,
    return
  }
  func.func @transform_0(%arg0: i32) -> (i32, i32) {
    %c0_i32 = arith.constant 0 : i32
    %c0_i32_0 = arith.constant 0 : i32
    return %arg0, %c0_i32 : i32, i32
  }
  func.func @transform_1(%arg0: i32) -> (i32, i32) {
    %c0_i32 = arith.constant 0 : i32
    %c0_i32_0 = arith.constant 0 : i32
    %c0_i32_1 = arith.constant 0 : i32
    return %c0_i32, %c0_i32_0 : i32, i32
  }
  func.func @transform_2(%arg0: i32) -> (i32, i32) {
    %c0_i32 = arith.constant 0 : i32
    %c0_i32_0 = arith.constant 0 : i32
    %c0_i32_1 = arith.constant 0 : i32
    return %c0_i32, %c0_i32_0 : i32, i32
  }
  func.func @transform_3(%arg0: i32) -> (i32, i32) {
    %c0_i32 = arith.constant 0 : i32
    %c0_i32_0 = arith.constant 0 : i32
    %c0_i32_1 = arith.constant 0 : i32
    return %c0_i32, %c0_i32_0 : i32, i32
  }
  func.func @transform_4(%arg0: i32) -> (i32, i32) {
    %c0_i32 = arith.constant 0 : i32
    %c0_i32_0 = arith.constant 0 : i32
    %c0_i32_1 = arith.constant 0 : i32
    return %c0_i32, %c0_i32_0 : i32, i32
  }
  func.func @transform_5(%arg0: i32) -> (i32, i32) {
    %c0_i32 = arith.constant 0 : i32
    %c0_i32_0 = arith.constant 0 : i32
    return %arg0, %c0_i32 : i32, i32
  }
}

</mosaic_0001>

<bundles_post_ra>
// kernel: tpu_custom_call.1
= control target key start
LH: loop header
LB: loop body
LE: loop exit
PB: predicated region body
PF: predicated region fallthrough
CT: control target
= control target key end

     0   :  { %10 = vsyncpa [#allocation3], 0  ;;  %vm57_vm0 = vcmask 261120   ;;  %vm195_vm1 = vcmask 1040384   ;;  %vm182_vm2 = vcmask 408576   ;;  %vm296_vm3 = vcmask 76800   ;;  %s538_s0 = inlined_call_operand.vmem [shape: f32[8,32], index: 0, kind: input, shape index: {}]   ;;  %s539_s1 = inlined_call_operand.vmem [shape: bf16[32,50], index: 1, kind: input, shape index: {}]   ;;  %s540_s2 = inlined_call_operand.vmem [shape: f32[1,50], index: 2, kind: input, shape index: {}]   ;;  %s541_s3 = inlined_call_operand.vmem [shape: bf16[50,10], index: 3, kind: input, shape index: {}]   ;;  %s542_s4 = inlined_call_operand.vmem [shape: f32[1,10], index: 4, kind: input, shape index: {}]   ;;  %s543_s5 = inlined_call_operand.hbm [shape: bf16[8,10], index: 5, kind: output, shape index: {}]  }
   0x1   :  { %v399_v0 = vld [vmem:[%s539_s1] sm:$0xff]   ;;  %v400_v1 = vld [vmem:[%s539_s1 + $0x8] sm:$0xff]   ;;  %v24_v5 = vld [vmem:[%s538_s0 + $0x10] sm:$0xff] }
   0x2   :  { %v22_v2 = vld [vmem:[%s538_s0] sm:$0xff]  ;;  %v23_v3 = vld [vmem:[%s538_s0 + $0x8] sm:$0xff]  ;;  %367 = vmatprep.subr.bf16.mxu0 %v399_v0  ;;  %v25_v6 = vld [vmem:[%s538_s0 + $0x18] sm:$0xff] }
   0x3   :  { %v30_v4 = vpack.c.bf16 %v23_v3, %v22_v2  ;;  %368 = vmatpush3.bf16.msra.mxu0 %v399_v0  ;;  %v26_v7 = vld [vmem:[%s538_s0 + $0x20] sm:$0xff]  ;;  %v27_v8 = vld [vmem:[%s538_s0 + $0x28] sm:$0xff]  ;;  %v31_v11 = vpack.c.bf16 %v25_v6, %v24_v5  ;;  %v28_v13 = vld [vmem:[%s538_s0 + $0x30] sm:$0xff] }
   0x4   :  { %369 = vmatprep.subr.bf16.mxu0 %v400_v1  ;;  %v401_v9 = vld [vmem:[%s541_s3] sm:$0xff]   ;;  %v402_v10 = vld [vmem:[%s541_s3 + $0x8] sm:$0xff]   ;;  %v32_v12 = vpack.c.bf16 %v27_v8, %v26_v7  ;;  %v29_v14 = vld [vmem:[%s538_s0 + $0x38] sm:$0xff] }
   0x5   :  { %371 = vmatprep.mubr.msk.bf16.mxu0 %vm57_vm0, %v30_v4  ;;  %379 = vmatprep.subr.bf16.mxu1 %v401_v9  ;;  %v33_v15 = vpack.c.bf16 %v29_v14, %v28_v13  ;;  %v403_v16 = vld [vmem:[%s541_s3 + $0x10] sm:$0xff]   ;;  %v404_v17 = vld [vmem:[%s541_s3 + $0x18] ss:$0 sps:$4 sm:$0x11]   ;;  %v321_v19 = vld [vmem:[%s540_s2] ss:$0 sm:$0xff] }
   0x6   :  { %380 = vmatpush3.bf16.msra.mxu1 %v401_v9  ;;  %v197_v18 = vsel %vm195_vm1, %v404_v17, 0  ;;  %v328_v48 = vld [vmem:[%s542_s4] ss:$0 sm:$0xff] }
   0x7   :  { %370 = vmatpush3.bf16.msra.mxu0 %v400_v1  ;;  %381 = vmatprep.subr.bf16.mxu1 %v402_v10 }
   0xa   :  { %372 = vmatmul.mubr.msk.bf16.vlgmr.msra.gmra.mrb[0].mxu0 %vm57_vm0, %v31_v11  ;;  %382 = vmatpush3.bf16.msra.mxu1 %v402_v10 }
   0xb   :  { %375 = vmatprep.mubr.msk.bf16.mxu0 %vm57_vm0, %v32_v12  ;;  %383 = vmatprep.subr.bf16.mxu1 %v403_v16 }
   0xe   :  { %384 = vmatpush3.bf16.msra.mxu1 %v403_v16 }
   0xf   :  { %395 = vmatprep.subr.msk.bf16.mxu1 %vm195_vm1, %v404_v17 }
  0x12   :  { %376 = vmatmul.mubr.msk.bf16.gmra.mrb[4].mxu0 %vm57_vm0, %v33_v15  ;;  %386 = vmatpush3.bf16.msra.mxu1 %v197_v18 }
  0xdd   :  { %v373_v20 = vpop.f32.mrb[0].mxu0 }
  0xde   :  { %v113_v21 = vadd.f32 %v373_v20, %v321_v19  ;;  %v104_v22 = vpop.f32.mrb[1].mxu0 }
  0xdf   :  { %v105_v23 = vadd.f32 %v321_v19, %v104_v22  ;;  %v374_v24 = vpop.f32.mrb[2].mxu0 }
  0xe0   :  { %v116_v25 = vadd.f32 %v374_v24, %v321_v19  ;;  %v107_v26 = vpop.f32.mrb[3].mxu0  ;;  %v137_v28 = vmax.f32 %v113_v21, 0.0 }
  0xe1   :  { %v108_v27 = vadd.f32 %v321_v19, %v107_v26  ;;  %v135_v30 = vmax.f32 %v105_v23, 0.0 }
  0xe2   :  { %v138_v29 = vmax.f32 %v116_v25, 0.0 }
  0xe3   :  { %v136_v31 = vmax.f32 %v108_v27, 0.0 }
  0xe4   :  { %v144_v32 = vpack.c.bf16 %v138_v29, %v137_v28 }
  0xe5   :  { %v377_v33 = vpop.f32.mrb[4].mxu0  ;;  %v143_v34 = vpack.c.bf16 %v136_v31, %v135_v30 }
  0xe6   :  { %v129_v35 = vadd.f32 %v377_v33, %v321_v19  ;;  %v120_v36 = vpop.f32.mrb[5].mxu0 }
  0xe7   :  { %v121_v37 = vadd.f32 %v321_v19, %v120_v36  ;;  %v378_v38 = vpop.f32.mrb[6].mxu0  ;;  %387 = vmatprep.mubr.msk.bf16.mxu1 %vm182_vm2, %v143_v34 }
  0xe8   :  { %v132_v39 = vadd.f32 %v378_v38, %v321_v19  ;;  %v123_v40 = vpop.f32.mrb[7].mxu0  ;;  %388 = vmatmul.mubr.msk.bf16.vlgmr.msra.gmra.mrb[0].mxu1 %vm182_vm2, %v144_v32  ;;  %v141_v42 = vmax.f32 %v129_v35, 0.0 }
  0xe9   :  { %v124_v41 = vadd.f32 %v321_v19, %v123_v40  ;;  %v139_v44 = vmax.f32 %v121_v37, 0.0 }
  0xea   :  { %v142_v43 = vmax.f32 %v132_v39, 0.0 }
  0xeb   :  { %v140_v45 = vmax.f32 %v124_v41, 0.0 }
  0xec   :  { %v146_v46 = vpack.c.bf16 %v142_v43, %v141_v42 }
  0xed   :  { %v145_v47 = vpack.c.bf16 %v140_v45, %v139_v44 }
  0xef   :  { %391 = vmatprep.mubr.msk.bf16.mxu1 %vm182_vm2, %v145_v47 }
  0xf0   :  { %392 = vmatmul.mubr.msk.bf16.gmra.mrb[4].mxu1 %vm182_vm2, %v146_v46 }
 0x1bb   :  { %v389_v49 = vpop.f32.mrb[0].mxu1 }
 0x1bc   :  { %v242_v50 = vadd.f32 %v389_v49, %v328_v48  ;;  %v233_v51 = vpop.f32.mrb[1].mxu1 }
 0x1bd   :  { %v234_v52 = vadd.f32 %v328_v48, %v233_v51  ;;  %v390_v53 = vpop.f32.mrb[2].mxu1 }
 0x1be   :  { %v347_v54 = vpack.c.bf16 %v242_v50, %v242_v50  ;;  %v245_v55 = vadd.f32 %v390_v53, %v328_v48  ;;  %v236_v56 = vpop.f32.mrb[3].mxu1 }
 0x1bf   :  { %v345_v57 = vpack.c.bf16 %v234_v52, %v234_v52  ;;  %v237_v58 = vadd.f32 %v328_v48, %v236_v56 }
 0x1c0   :  { %299 = vst.msk [vmem:[#allocation2 + $0x8] sm:$0xf] %vm296_vm3, %v347_v54  ;;  %v348_v59 = vpack.c.bf16 %v245_v55, %v245_v55 }
 0x1c1   :  { %297 = vst.msk [vmem:[#allocation2] sm:$0xf] %vm296_vm3, %v345_v57  ;;  %v346_v60 = vpack.c.bf16 %v237_v58, %v237_v58 }
 0x1c2   :  { %300 = vst.msk [vmem:[#allocation2 + $0xc] sm:$0xf] %vm296_vm3, %v348_v59 }
 0x1c3   :  { %298 = vst.msk [vmem:[#allocation2 + $0x4] sm:$0xf] %vm296_vm3, %v346_v60  ;;  %v393_v61 = vpop.f32.mrb[4].mxu1 }
 0x1c4   :  { %v258_v62 = vadd.f32 %v393_v61, %v328_v48  ;;  %v249_v63 = vpop.f32.mrb[5].mxu1 }
 0x1c5   :  { %v250_v0 = vadd.f32 %v328_v48, %v249_v63  ;;  %v394_v1 = vpop.f32.mrb[6].mxu1 }
 0x1c6   :  { %v351_v2 = vpack.c.bf16 %v258_v62, %v258_v62  ;;  %v261_v3 = vadd.f32 %v394_v1, %v328_v48  ;;  %v252_v4 = vpop.f32.mrb[7].mxu1 }
 0x1c7   :  { %v349_v5 = vpack.c.bf16 %v250_v0, %v250_v0  ;;  %v253_v6 = vadd.f32 %v328_v48, %v252_v4 }
 0x1c8   :  { %303 = vst.msk [vmem:[#allocation2 + $0x18] sm:$0xf] %vm296_vm3, %v351_v2  ;;  %v352_v7 = vpack.c.bf16 %v261_v3, %v261_v3 }
 0x1c9   :  { %301 = vst.msk [vmem:[#allocation2 + $0x10] sm:$0xf] %vm296_vm3, %v349_v5  ;;  %v350_v8 = vpack.c.bf16 %v253_v6, %v253_v6 }
 0x1ca   :  { %304 = vst.msk [vmem:[#allocation2 + $0x1c] sm:$0xf] %vm296_vm3, %v352_v7 }
 0x1cb   :  { %302 = vst.msk [vmem:[#allocation2 + $0x14] sm:$0xf] %vm296_vm3, %v350_v8 }
 0x1cc   :  { %309 = vsyncadd [#allocation3], 448  ;;  %s429_s4 = smov [#allocation2]  }
 0x1cd   :  { %s310_s21 = sshll.u32 %s429_s4, 4  ;;  %s311_s21 = int_to_ptr.vmem [resolvable:$true] %s310_s21 }
 0x1ce   :  { %s405_s22 = scalar_lea.vmem %s311_s21, 64  ;;  %s409_s23 = scalar_lea.vmem %s311_s21, 512 }
 0x1cf   :  { %p406_p0 = scmp.ne.s32.totalorder %s311_s21, %s405_s22  ;;  %p410_p1 = scmp.lt.s32.totalorder %s311_s21, %s311_s21 }
 0x1d0   :  { %p411_p2 = scmp.lt.s32.totalorder %s409_s23, %s405_s22 }
 0x1d2   :  { %p412_p3 = por %p411_p2, %p410_p1 }
 0x1d4   :  { %p413_p4 = pnand %p412_p3, %p406_p0 }
 0x1d6   :  { %416 = shalt.err (!%p413_p4)
}
 0x1d7   :  { %s417_s26 = scalar_lea.hbm %s543_s5, 64 }
 0x1d8   :  { %p418_p5 = scmp.ne.s32.totalorder %s543_s5, %s417_s26  ;;  %p421_p6 = scmp.lt.u32.totalorder %s417_s26, %s543_s5 }
 0x1da   :  { %p423_p7 = pnand %p421_p6, %p418_p5 }
 0x1dc   :  { %426 = shalt.err (!%p423_p7)
}
 0x1dd   :  { %s430_s30 = smov 64   ;;  %s431_s6 = smov 4  }
 0x1de   :  { %316 = dma.vmem_to_hbm [thread:$0]  %s311_s21, 64, %s543_s5, [#allocation3], %s430_s30, %s430_s30, %s431_s6  }
 0x1df   :  { %427 = dma.done.wait [#allocation3], 512  }
 0x1e0   :  { %428 = vsyncadd [#allocation3], 4294966784 }
 0x1e1   :  { %320 = vsyncpa [#allocation3], 1 }

</bundles_post_ra>
